<compile_context>
chip_gen: v7x
topology: tpu7x:2x2x1
jax: 0.10.0
libtpu: 0.0.40
codegen_flags: <defaults>
</compile_context>

<pallas_src>
import functools

import jax
import jax.numpy as jnp
from jax import lax
from jax.experimental import pallas as pl
from jax.experimental.pallas import tpu as pltpu

LANE = 128
SUBLANE = 8
MAX_ROW_TILE = 8192   # (8192, 128) f32 = 4 MiB per input per pipeline buffer


def _round_up(x, m):
    return (x + m - 1) // m * m


def _num_tensorcores():
    """Best-effort TensorCores-per-chip count; 1 is always a safe fallback."""
    try:
        info = pltpu.get_tpu_info()
        for attr in ("num_cores", "core_count", "num_tensorcores",
                     "tensorcore_count"):
            n = getattr(info, attr, None)
            if isinstance(n, int) and n in (1, 2):
                return n
    except Exception:
        pass
    try:
        if "v7" in jax.devices()[0].device_kind.lower():
            return 2          # v7x: 2 TensorCores per chip
    except Exception:
        pass
    return 1                  # v5e / v6e (and safe default)


def _uncertain_bce_kernel(p_ref, t_ref, w_ref, out_ref, *, epsilon, rows,
                          row_tile, steps_per_core, full_blocks, needs_mask,
                          k_acc):
    i = pl.program_id(1)          # sequential reduction axis (last)

    @pl.when(i == 0)
    def _():
        out_ref[...] = jnp.zeros_like(out_ref)

    def accumulate(apply_mask):
        # Upcast in-register: inputs are streamed at native dtype.
        p = p_ref[...].astype(jnp.float32)
        t = t_ref[...].astype(jnp.float32)
        w = w_ref[...].astype(jnp.float32)
        if epsilon:
            w = w + jnp.float32(epsilon)
        # PyTorch BCELoss clamps the log terms at -100.
        log_p = jnp.maximum(jnp.log(p), -100.0)
        log_1mp = jnp.maximum(jnp.log(1.0 - p), -100.0)
        # t*log_p + (1-t)*log_1mp == log_1mp + t*(log_p - log_1mp): one fewer
        # VALU op per element.
        elem = -w * (log_1mp + t * (log_p - log_1mp))
        if apply_mask:
            s = pl.program_id(0) * steps_per_core + i    # logical block index
            row0 = s * row_tile
            row_l = lax.broadcasted_iota(jnp.int32, (row_tile, LANE), 0)
            # Select (not multiply): garbage rows in a partial / duplicate
            # block can produce NaN in `elem`; where() discards it.
            elem = jnp.where(row0 + row_l < rows, elem, 0.0)
        # k_acc independent (8,128) accumulation chains hide VALU add latency.
        partial = elem.reshape(row_tile // (SUBLANE * k_acc),
                               SUBLANE * k_acc, LANE).sum(axis=0)
        out_ref[...] += partial[None]

    if not needs_mask:
        accumulate(False)        # fully aligned launch: no mask code at all
    else:
        s = pl.program_id(0) * steps_per_core + i

        @pl.when(s < full_blocks)            # interior blocks: fast path
        def _():
            accumulate(False)

        @pl.when(s >= full_blocks)           # partial last / duplicate block
        def _():
            accumulate(True)


def _elem_loss_f32(p, t, w, epsilon):
    p = p.astype(jnp.float32)
    t = t.astype(jnp.float32)
    w = w.astype(jnp.float32)
    if epsilon:
        w = w + jnp.float32(epsilon)
    log_p = jnp.maximum(jnp.log(p), -100.0)
    log_1mp = jnp.maximum(jnp.log(1.0 - p), -100.0)
    return -w * (log_1mp + t * (log_p - log_1mp))


@functools.partial(jax.jit, static_argnames=("epsilon",))
def uncertain_bce(preds, target, uncertainty, epsilon=0.0):
    assert preds.shape == target.shape == uncertainty.shape
    n_elem = preds.size
    epsilon = float(epsilon)

    p = preds.reshape(-1)
    t = target.reshape(-1)
    w = uncertainty.reshape(-1)

    rows = n_elem // LANE
    n_main = rows * LANE
    tail = n_elem - n_main          # < 128 ragged elements

    total = jnp.float32(0.0)

    if tail:
        # Ragged tail handled with plain jnp: avoids padding (reading and
        # re-writing) all three inputs in HBM just for lane alignment.
        total = total + jnp.sum(
            _elem_loss_f32(p[n_main:], t[n_main:], w[n_main:], epsilon))

    if rows:
        if tail:
            p, t, w = p[:n_main], t[:n_main], w[:n_main]
        p2 = p.reshape(rows, LANE)
        t2 = t.reshape(rows, LANE)
        w2 = w.reshape(rows, LANE)

        row_tile = min(MAX_ROW_TILE, _round_up(rows, SUBLANE))
        if row_tile % (SUBLANE * 4) == 0:
            k_acc = 4
        elif row_tile % (SUBLANE * 2) == 0:
            k_acc = 2
        else:
            k_acc = 1

        steps_total = pl.cdiv(rows, row_tile)
        num_cores = _num_tensorcores() if steps_total >= 2 else 1
        steps_per_core = pl.cdiv(steps_total, num_cores)
        full_blocks = rows // row_tile
        needs_mask = (rows % row_tile != 0) or \
                     (num_cores * steps_per_core != steps_total)

        def in_index(c, i):
            # Clamp so the DMA never leaves the array; a clamped duplicate
            # block is fully masked inside the kernel (contributes zero).
            return (jnp.minimum(c * steps_per_core + i, steps_total - 1), 0)

        in_spec = pl.BlockSpec((row_tile, LANE), in_index)
        out_rows = SUBLANE * k_acc

        kernel = functools.partial(
            _uncertain_bce_kernel,
            epsilon=epsilon, rows=rows, row_tile=row_tile,
            steps_per_core=steps_per_core, full_blocks=full_blocks,
            needs_mask=needs_mask, k_acc=k_acc)

        if num_cores > 1:
            dim_sem = (pltpu.CORE_PARALLEL, pltpu.ARBITRARY)   # real TC split
        else:
            dim_sem = ("arbitrary", "arbitrary")

        # 3 inputs x 2 pipeline buffers x block bytes (f32 upper bound) plus
        # slack for the resident accumulator block and internal scratch.
        block_bytes = row_tile * LANE * 4
        vmem_limit = int(min(3 * 2 * block_bytes + (6 << 20), 56 << 20))

        partials = pl.pallas_call(
            kernel,
            out_shape=jax.ShapeDtypeStruct((num_cores, out_rows, LANE),
                                           jnp.float32),
            grid_spec=pltpu.PrefetchScalarGridSpec(
                num_scalar_prefetch=0,
                grid=(num_cores, steps_per_core),
                in_specs=[in_spec, in_spec, in_spec],
                out_specs=pl.BlockSpec((1, out_rows, LANE),
                                       lambda c, i: (c, 0, 0)),
            ),
            compiler_params=pltpu.CompilerParams(
                dimension_semantics=dim_sem,
                vmem_limit_bytes=vmem_limit,
            ),
        )(p2, t2, w2)

        total = total + jnp.sum(partials)

    return (total / jnp.float32(n_elem)).astype(preds.dtype)


def _reference(preds, target, uncertainty, epsilon=0.0):
    w = uncertainty + epsilon
    log_p = jnp.maximum(jnp.log(preds), -100.0)
    log_1mp = jnp.maximum(jnp.log(1.0 - preds), -100.0)
    return jnp.mean(-w * (target * log_p + (1.0 - target) * log_1mp))


if __name__ == "__main__":
    key = jax.random.PRNGKey(0)
    k1, k2, k3 = jax.random.split(key, 3)

    # NCHW inputs, as the PyTorch module would receive.
    shape = (2, 4, 16, 16)
    preds = jax.nn.sigmoid(jax.random.normal(k1, shape, jnp.float32))
    target = (jax.random.uniform(k2, shape) > 0.5).astype(jnp.float32)
    uncertainty = jax.random.uniform(k3, shape, jnp.float32)

    for eps in (0.0, 0.3):          # module default is 0; also exercise eps>0
        loss = jax.block_until_ready(
            uncertain_bce(preds, target, uncertainty, epsilon=eps))
        ref = _reference(preds, target, uncertainty, eps)
        assert jnp.allclose(loss, ref, rtol=1e-5, atol=1e-6), (eps, loss, ref)

    print("KERNEL_OK")
</pallas_src>

<mosaic_0001>
module attributes {stable_mosaic.version = 11 : i64} {
  func.func @_uncertain_bce_kernel(%arg0: i32, %arg1: i32, %arg2: memref<16x128xf32, #tpu.memory_space<vmem>>, %arg3: memref<16x128xf32, #tpu.memory_space<vmem>>, %arg4: memref<16x128xf32, #tpu.memory_space<vmem>>, %arg5: memref<1x16x128xf32, #tpu.memory_space<vmem>>) attributes {dimension_semantics = [#tpu.dimension_semantics<arbitrary>, #tpu.dimension_semantics<arbitrary>], iteration_bounds = array<i64: 1, 1>, scalar_prefetch = 0 : i64, scratch_operands = 0 : i64, tpu.core_type = #tpu.core_type<tc>, window_params = [{transform_indices = @transform_0, window_bounds = array<i64: 16, 128>}, {transform_indices = @transform_1, window_bounds = array<i64: 16, 128>}, {transform_indices = @transform_2, window_bounds = array<i64: 16, 128>}, {transform_indices = @transform_3, window_bounds = array<i64: 1, 16, 128>}]} {
    %c0_i32 = arith.constant 0 : i32
    %0 = arith.cmpi eq, %arg1, %c0_i32 : i32
    %1 = arith.extui %0 : i1 to i32
    %c0_i32_0 = arith.constant 0 : i32
    %2 = arith.cmpi ne, %1, %c0_i32_0 : i32
    scf.if %2 {
      %cst_16 = arith.constant 0.000000e+00 : f32
      %26 = vector.broadcast %cst_16 : f32 to vector<1x16x128xf32>
      %c0_17 = arith.constant 0 : index
      %c0_18 = arith.constant 0 : index
      %c0_19 = arith.constant 0 : index
      %27 = vector.load %arg5[%c0_17, %c0_18, %c0_19] : memref<1x16x128xf32, #tpu.memory_space<vmem>>, vector<1x16x128xf32>
      tpu.vector_store %arg5[%c0_17, %c0_18, %c0_19], %26 {strides = array<i32>} : memref<1x16x128xf32, #tpu.memory_space<vmem>>, vector<1x16x128xf32>,
    } else {
    }
    %c0 = arith.constant 0 : index
    %c0_1 = arith.constant 0 : index
    %3 = vector.load %arg2[%c0, %c0_1] : memref<16x128xf32, #tpu.memory_space<vmem>>, vector<16x128xf32>
    %c0_2 = arith.constant 0 : index
    %c0_3 = arith.constant 0 : index
    %4 = vector.load %arg3[%c0_2, %c0_3] : memref<16x128xf32, #tpu.memory_space<vmem>>, vector<16x128xf32>
    %c0_4 = arith.constant 0 : index
    %c0_5 = arith.constant 0 : index
    %5 = vector.load %arg4[%c0_4, %c0_5] : memref<16x128xf32, #tpu.memory_space<vmem>>, vector<16x128xf32>
    %6 = math.log %3 : vector<16x128xf32>
    %cst = arith.constant -1.000000e+02 : f32
    %7 = vector.broadcast %cst : f32 to vector<16x128xf32>
    %8 = arith.maximumf %6, %7 : vector<16x128xf32>
    %cst_6 = arith.constant 1.000000e+00 : f32
    %9 = vector.broadcast %cst_6 : f32 to vector<16x128xf32>
    %10 = arith.subf %9, %3 : vector<16x128xf32>
    %11 = math.log %10 : vector<16x128xf32>
    %cst_7 = arith.constant -1.000000e+02 : f32
    %12 = vector.broadcast %cst_7 : f32 to vector<16x128xf32>
    %13 = arith.maximumf %11, %12 : vector<16x128xf32>
    %cst_8 = arith.constant 0.000000e+00 : f32
    %14 = vector.broadcast %cst_8 : f32 to vector<16x128xf32>
    %15 = arith.subf %14, %5 : vector<16x128xf32>
    %16 = arith.subf %8, %13 : vector<16x128xf32>
    %17 = arith.mulf %4, %16 : vector<16x128xf32>
    %18 = arith.addf %13, %17 : vector<16x128xf32>
    %19 = arith.mulf %15, %18 : vector<16x128xf32>
    %20 = vector.shape_cast %19 : vector<16x128xf32> to vector<1x16x128xf32>
    %cst_9 = arith.constant dense<0.000000e+00> : vector<16x128xf32>
    %21 = vector.multi_reduction <add>, %20, %cst_9 [0] : vector<1x16x128xf32> to vector<16x128xf32>
    %c0_10 = arith.constant 0 : index
    %c0_11 = arith.constant 0 : index
    %c0_12 = arith.constant 0 : index
    %22 = vector.load %arg5[%c0_10, %c0_11, %c0_12] : memref<1x16x128xf32, #tpu.memory_space<vmem>>, vector<1x16x128xf32>
    %23 = vector.shape_cast %21 : vector<16x128xf32> to vector<1x16x128xf32>
    %24 = arith.addf %22, %23 : vector<1x16x128xf32>
    %c0_13 = arith.constant 0 : index
    %c0_14 = arith.constant 0 : index
    %c0_15 = arith.constant 0 : index
    %25 = vector.load %arg5[%c0_13, %c0_14, %c0_15] : memref<1x16x128xf32, #tpu.memory_space<vmem>>, vector<1x16x128xf32>
    tpu.vector_store %arg5[%c0_13, %c0_14, %c0_15], %24 {strides = array<i32>} : memref<1x16x128xf32, #tpu.memory_space<vmem>>, vector<1x16x128xf32>,
    return
  }
  func.func @transform_0(%arg0: i32, %arg1: i32) -> (i32, i32) {
    %c1_i32 = arith.constant 1 : i32
    %0 = arith.muli %arg0, %c1_i32 : i32
    %1 = arith.addi %0, %arg1 : i32
    %c0_i32 = arith.constant 0 : i32
    %2 = arith.minsi %1, %c0_i32 : i32
    %c0_i32_0 = arith.constant 0 : i32
    %c0_i32_1 = arith.constant 0 : i32
    return %2, %c0_i32_0 : i32, i32
  }
  func.func @transform_1(%arg0: i32, %arg1: i32) -> (i32, i32) {
    %c1_i32 = arith.constant 1 : i32
    %0 = arith.muli %arg0, %c1_i32 : i32
    %1 = arith.addi %0, %arg1 : i32
    %c0_i32 = arith.constant 0 : i32
    %2 = arith.minsi %1, %c0_i32 : i32
    %c0_i32_0 = arith.constant 0 : i32
    %c0_i32_1 = arith.constant 0 : i32
    return %2, %c0_i32_0 : i32, i32
  }
  func.func @transform_2(%arg0: i32, %arg1: i32) -> (i32, i32) {
    %c1_i32 = arith.constant 1 : i32
    %0 = arith.muli %arg0, %c1_i32 : i32
    %1 = arith.addi %0, %arg1 : i32
    %c0_i32 = arith.constant 0 : i32
    %2 = arith.minsi %1, %c0_i32 : i32
    %c0_i32_0 = arith.constant 0 : i32
    %c0_i32_1 = arith.constant 0 : i32
    return %2, %c0_i32_0 : i32, i32
  }
  func.func @transform_3(%arg0: i32, %arg1: i32) -> (i32, i32, i32) {
    %c0_i32 = arith.constant 0 : i32
    %c0_i32_0 = arith.constant 0 : i32
    %c0_i32_1 = arith.constant 0 : i32
    return %arg0, %c0_i32, %c0_i32_0 : i32, i32, i32
  }
}

</mosaic_0001>

<bundles_post_ra>
// kernel: uncertain_bce.1
= control target key start
LH: loop header
LB: loop body
LE: loop exit
PB: predicated region body
PF: predicated region fallthrough
CT: control target
= control target key end

     0   :  { %s229_s0 = inlined_call_operand.vmem [shape: f32[16,128], index: 0, kind: input, shape index: {}]   ;;  %s230_s1 = inlined_call_operand.vmem [shape: f32[16,128], index: 1, kind: input, shape index: {}]   ;;  %s231_s2 = inlined_call_operand.vmem [shape: f32[16,128], index: 2, kind: input, shape index: {}]   ;;  %s232_s3 = inlined_call_operand.vmem [shape: f32[1,16,128], index: 3, kind: output, shape index: {}]  }
   0x1   :  { %v116_v0 = vld [vmem:[%s229_s0] sm:$0xff]  ;;  %v117_v2 = vld [vmem:[%s229_s0 + $0x8] sm:$0xff] }
   0x2   :  { %177 = vlog2.f32 %v116_v0  ;;  %v128_v1 = vsub.f32 1.0, %v116_v0  ;;  %v129_v3 = vsub.f32 1.0, %v117_v2  ;;  %v118_v15 = vld [vmem:[%s230_s1] sm:$0xff]  ;;  %v119_v19 = vld [vmem:[%s230_s1 + $0x8] sm:$0xff] }
   0x3   :  { %179 = vlog2.f32 %v117_v2  ;;  %v120_v16 = vld [vmem:[%s231_s2] sm:$0xff]  ;;  %v121_v20 = vld [vmem:[%s231_s2 + $0x8] sm:$0xff] }
   0x4   :  { %181 = vlog2.f32 %v128_v1  ;;  %v136_v22 = vsub.f32 0.0, %v120_v16  ;;  %v137_v24 = vsub.f32 0.0, %v121_v20 }
   0x5   :  { %183 = vlog2.f32 %v129_v3 }
   0xc   :  { %v178_v4 = vpop.eup %177 }
   0xd   :  { %v180_v5 = vpop.eup %179  ;;  %v123_v6 = vmul.f32 0.6931472, %v178_v4 }
   0xe   :  { %v182_v7 = vpop.eup %181  ;;  %v125_v8 = vmul.f32 0.6931472, %v180_v5 }
   0xf   :  { %v184_v9 = vpop.eup %183  ;;  %v126_v10 = vmax.f32 %v123_v6, -100.0  ;;  %v131_v11 = vmul.f32 0.6931472, %v182_v7 }
  0x10   :  { %v127_v12 = vmax.f32 %v125_v8, -100.0  ;;  %v133_v13 = vmul.f32 0.6931472, %v184_v9 }
  0x11   :  { %v134_v14 = vmax.f32 %v131_v11, -100.0 }
  0x12   :  { %v135_v17 = vmax.f32 %v133_v13, -100.0 }
  0x13   :  { %v138_v18 = vsub.f32 %v126_v10, %v134_v14 }
  0x14   :  { %v139_v21 = vsub.f32 %v127_v12, %v135_v17 }
  0x15   :  { %v140_v23 = vmul.f32 %v138_v18, %v118_v15 }
  0x16   :  { %v141_v25 = vmul.f32 %v139_v21, %v119_v19 }
  0x17   :  { %v142_v26 = vadd.f32 %v140_v23, %v134_v14 }
  0x18   :  { %v143_v27 = vadd.f32 %v141_v25, %v135_v17 }
  0x19   :  { %v144_v28 = vmul.f32 %v142_v26, %v136_v22 }
  0x1a   :  { %v145_v29 = vmul.f32 %v143_v27, %v137_v24 }
  0x1b   :  { %152 = vst [vmem:[%s232_s3] sm:$0xff] %v144_v28 }
  0x1c   :  { %153 = vst [vmem:[%s232_s3 + $0x8] sm:$0xff] %v145_v29 }

</bundles_post_ra>
